<compile_context>
chip_gen: v7x
topology: tpu7x:2x2x1
jax: 0.10.0
libtpu: 0.0.40
codegen_flags: <defaults>
</compile_context>

<pallas_src>
import jax
import jax.numpy as jnp
from jax.experimental import pallas as pl
from jax.experimental.pallas import tpu as pltpu

EMBED_DIM = 32
TITLE_DIM = 15
COMPUTE_DTYPE = jnp.bfloat16          # MXU operand dtype; accumulation is f32
VMEM_LIMIT = 48 * 1024 * 1024         # headroom vs. v7x's 64 MiB VMEM
CONV_TILE_CAP = 128                   # images per conv grid step
TITLE_TILE_CAP = 256                  # rows per title grid step
HEAD_TILE_CAP = 1024                  # rows per head grid step


def _pick_batch_tile(n, cap):
    """Largest multiple-of-8 divisor of n that is <= cap while keeping >= 2
    grid steps (two v7x TensorCores); else run the whole batch in one step
    (a block whose dims equal the full array dims is always layout-legal)."""
    # TODO(synk): large batches with no multiple-of-8 divisor fall back to a
    # single (possibly big) step; pad the batch upstream if that matters.
    cands = [t for t in range(8, min(cap, n // 2) + 1, 8) if n % t == 0]
    return max(cands) if cands else n


def _mosaic_params():
    return pltpu.CompilerParams(dimension_semantics=("parallel",),
                                vmem_limit_bytes=VMEM_LIMIT)


# ---------------------------------------------------------------------------
# Kernel 1: fused title text-CNN (window build + matmul + bias + ReLU + max)
# ---------------------------------------------------------------------------
def _make_title_kernel(t_len):
    def kernel(x_ref, w_ref, b_ref, o_ref):
        tb, _, em = x_ref.shape
        taps = [x_ref[:, s:s + t_len, :].reshape(tb * t_len, em)
                for s in range(5)]
        win = jnp.concatenate(taps, axis=-1)                   # (tb*T, 160) bf16
        y = jnp.dot(win, w_ref[...], preferred_element_type=jnp.float32)
        y = jnp.maximum(y + b_ref[...], 0.0)                   # (tb*T, 32) f32
        y = y.reshape(tb, t_len, 32)
        feats = [jnp.max(y[:, :t_len - k + 1, 8 * g:8 * g + 8], axis=1)
                 for g, k in enumerate((2, 3, 4, 5))]          # valid positions
        o_ref[...] = jnp.concatenate(feats, axis=-1)           # (tb, 32) f32
    return kernel


def title_cnn(title_pad_bf16, wt, bt):
    B, tp4, em = title_pad_bf16.shape
    t_len = tp4 - 4
    tb = _pick_batch_tile(B, TITLE_TILE_CAP)
    return pl.pallas_call(
        _make_title_kernel(t_len),
        out_shape=jax.ShapeDtypeStruct((B, 32), jnp.float32),
        grid_spec=pltpu.PrefetchScalarGridSpec(
            num_scalar_prefetch=0,
            grid=(B // tb,),
            in_specs=[pl.BlockSpec((tb, tp4, em), lambda i: (i, 0, 0)),
                      pl.BlockSpec(wt.shape, lambda i: (0, 0)),
                      pl.BlockSpec(bt.shape, lambda i: (0, 0))],
            out_specs=pl.BlockSpec((tb, 32), lambda i: (i, 0))),
        compiler_params=_mosaic_params(),
    )(title_pad_bf16, wt, bt)


# ---------------------------------------------------------------------------
# Kernel 2: 3x3/stride-2/pad-1 conv + bias + ReLU (+ fused 2x2 maxpool / mean)
#
# The wrapper supplies a parity-split view xr of the zero-padded NHWC input:
#   pool variant (factor 4): xr[b, u*Hr+i, (v*Wr+j)*Cin+c] = xpad[b, 4i+u, 4j+v, c]
#   mean variant (factor 2): xr[b, p*Hq+i, (q*Wq+j)*Cin+c] = xpad[b, 2i+p, 2j+q, c]
# so every tap of every pool-parity class is a contiguous (rows, lanes) slice.
# The packed weight is block-diagonal over the Wp/Wo output columns, so one dot
# produces a lane layout of (out_col, out_channel) directly.
# ---------------------------------------------------------------------------
def _make_conv_pool_kernel(hp, wp, hr, wr, cin):
    wpcin = wp * cin

    def kernel(xr_ref, w_ref, b_ref, o_ref):
        tb = xr_ref.shape[0]
        ncols = w_ref.shape[1]                                  # wp * cout
        pooled = None
        for a in range(2):                                      # pool row parity
            for bp in range(2):                                 # pool col parity
                taps = []
                for kh in range(3):
                    qh, ph = divmod(kh, 2)
                    sh, rh = divmod(a + qh, 2)
                    u = 2 * rh + ph
                    for kw in range(3):
                        qw, pw = divmod(kw, 2)
                        sw, rw = divmod(bp + qw, 2)
                        v = 2 * rw + pw
                        r0 = u * hr + sh
                        c0 = (v * wr + sw) * cin
                        tap = xr_ref[:, r0:r0 + hp, c0:c0 + wpcin]
                        taps.append(tap.reshape(tb * hp, wpcin))
                xcat = jnp.concatenate(taps, axis=-1)           # (tb*hp, 9*wp*cin)
                y = jnp.dot(xcat, w_ref[...],
                            preferred_element_type=jnp.float32)
                y = jnp.maximum(y + b_ref[...], 0.0)            # bias+ReLU (f32)
                pooled = y if pooled is None else jnp.maximum(pooled, y)
        o_ref[...] = pooled.reshape(tb, hp, ncols).astype(o_ref.dtype)
    return kernel


def _make_conv_mean_kernel(ho, wo, hq, wq, cin):
    wocin = wo * cin

    def kernel(xr_ref, w_ref, b_ref, o_ref):
        tb = xr_ref.shape[0]
        cout = w_ref.shape[1] // wo
        taps = []
        for kh in range(3):
            qh, ph = divmod(kh, 2)
            for kw in range(3):
                qw, pw = divmod(kw, 2)
                r0 = ph * hq + qh
                c0 = (pw * wq + qw) * cin
                tap = xr_ref[:, r0:r0 + ho, c0:c0 + wocin]
                taps.append(tap.reshape(tb * ho, wocin))
        xcat = jnp.concatenate(taps, axis=-1)                   # (tb*ho, 9*wo*cin)
        y = jnp.dot(xcat, w_ref[...], preferred_element_type=jnp.float32)
        y = jnp.maximum(y + b_ref[...], 0.0)                    # (tb*ho, wo*cout)
        if ho == 1 and wo == 1:                                 # AdaptiveAvgPool(1,1)
            o_ref[...] = y
        else:
            y = jnp.sum(y.reshape(tb, ho, wo * cout), axis=1)   # (tb, wo*cout)
            acc = y[:, 0:cout]
            for j in range(1, wo):
                acc = acc + y[:, j * cout:(j + 1) * cout]
            o_ref[...] = acc / float(ho * wo)
    return kernel


def _parity_split(x_nhwc, factor, hb, wb):
    """(B,H,W,C) -> (B, factor*hb, factor*wb*C) with
       out[b, u*hb+i, (v*wb+j)*C+c] = xpad[b, factor*i+u, factor*j+v, c],
       where xpad has 1 zero row/col of top/left padding."""
    B, H, W, C = x_nhwc.shape
    xp = jnp.pad(x_nhwc, ((0, 0),
                          (1, factor * hb - 1 - H),
                          (1, factor * wb - 1 - W),
                          (0, 0)))
    xr = xp.reshape(B, hb, factor, wb, factor, C).transpose(0, 2, 1, 4, 3, 5)
    return xr.reshape(B, factor * hb, factor * wb * C)


def _conv_pool_call(x_nhwc, wblk, bt, hp, wp):
    B, _, _, cin = x_nhwc.shape
    hr, wr = hp + 1, wp + 1
    ncols = bt.shape[1]
    cout = ncols // wp
    xr = _parity_split(x_nhwc, 4, hr, wr).astype(COMPUTE_DTYPE)
    tb = _pick_batch_tile(B, CONV_TILE_CAP)
    out = pl.pallas_call(
        _make_conv_pool_kernel(hp, wp, hr, wr, cin),
        out_shape=jax.ShapeDtypeStruct((B, hp, ncols), COMPUTE_DTYPE),
        grid_spec=pltpu.PrefetchScalarGridSpec(
            num_scalar_prefetch=0,
            grid=(B // tb,),
            in_specs=[pl.BlockSpec((tb, 4 * hr, 4 * wr * cin),
                                   lambda i: (i, 0, 0)),
                      pl.BlockSpec(wblk.shape, lambda i: (0, 0)),
                      pl.BlockSpec(bt.shape, lambda i: (0, 0))],
            out_specs=pl.BlockSpec((tb, hp, ncols), lambda i: (i, 0, 0))),
        compiler_params=_mosaic_params(),
    )(xr, wblk, bt)
    return out.reshape(B, hp, wp, cout)


def _conv_mean_call(x_nhwc, wblk, bt, ho, wo):
    B, _, _, cin = x_nhwc.shape
    hq, wq = ho + 1, wo + 1
    cout = bt.shape[1] // wo
    xr = _parity_split(x_nhwc, 2, hq, wq).astype(COMPUTE_DTYPE)
    tb = _pick_batch_tile(B, CONV_TILE_CAP)
    return pl.pallas_call(
        _make_conv_mean_kernel(ho, wo, hq, wq, cin),
        out_shape=jax.ShapeDtypeStruct((B, cout), jnp.float32),
        grid_spec=pltpu.PrefetchScalarGridSpec(
            num_scalar_prefetch=0,
            grid=(B // tb,),
            in_specs=[pl.BlockSpec((tb, 2 * hq, 2 * wq * cin),
                                   lambda i: (i, 0, 0)),
                      pl.BlockSpec(wblk.shape, lambda i: (0, 0)),
                      pl.BlockSpec(bt.shape, lambda i: (0, 0))],
            out_specs=pl.BlockSpec((tb, cout), lambda i: (i, 0))),
        compiler_params=_mosaic_params(),
    )(xr, wblk, bt)


# ---------------------------------------------------------------------------
# Kernel 3: fused FC head -- exactly two dots, 256-lane-aligned output blocks
# ---------------------------------------------------------------------------
def _head_kernel(x_ref, w1_ref, b1_ref, w2_ref, b2_ref, o_ref):
    f32 = jnp.float32
    # stage 1: six embedding FCs (block-diagonal) + identity pass-through of
    # title_f / poster_pooled (both provably >= 0, so ReLU is a no-op on them)
    h1 = jnp.dot(x_ref[...], w1_ref[...], preferred_element_type=f32)
    h1 = jnp.maximum(h1 + b1_ref[...], 0.0).astype(x_ref.dtype)   # (tb, 288)
    # stage 2: user_final / movie_final / poster_fc as one block matmul with
    # 256-aligned output blocks (padded columns are exactly zero -> contribute
    # nothing to the final reduction).
    z = jnp.dot(h1, w2_ref[...], preferred_element_type=f32) + b2_ref[...]
    nb = w2_ref.shape[1] // 3                                      # 256
    user = jnp.tanh(z[:, 0:nb])
    movie = jnp.tanh(z[:, nb:2 * nb]) + z[:, 2 * nb:3 * nb]
    o_ref[...] = jnp.sum(user * movie, axis=1, keepdims=True)


def fused_head(slab, w1, b1, w2, b2):
    B, F = slab.shape
    tb = _pick_batch_tile(B, HEAD_TILE_CAP)
    return pl.pallas_call(
        _head_kernel,
        out_shape=jax.ShapeDtypeStruct((B, 1), jnp.float32),
        grid_spec=pltpu.PrefetchScalarGridSpec(
            num_scalar_prefetch=0,
            grid=(B // tb,),
            in_specs=[pl.BlockSpec((tb, F), lambda i: (i, 0)),
                      pl.BlockSpec(w1.shape, lambda i: (0, 0)),
                      pl.BlockSpec(b1.shape, lambda i: (0, 0)),
                      pl.BlockSpec(w2.shape, lambda i: (0, 0)),
                      pl.BlockSpec(b2.shape, lambda i: (0, 0))],
            out_specs=pl.BlockSpec((tb, 1), lambda i: (i, 0))),
        compiler_params=_mosaic_params(),
    )(slab, w1, b1, w2, b2)


# ---------------------------------------------------------------------------
# One-time weight packing (hoisted out of forward)
# ---------------------------------------------------------------------------
def _poster_plan(H, W):
    plan, h, w = [], H, W
    for i, (cin, cout) in enumerate([(3, 16), (16, 32), (32, 64)]):
        ho, wo = (h - 1) // 2 + 1, (w - 1) // 2 + 1
        if i < 2:
            hp, wp = ho // 2, wo // 2
            assert hp >= 1 and wp >= 1, "poster image too small"
            plan.append(dict(layer=i, cin=cin, cout=cout, kind='pool',
                             hp=hp, wp=wp))
            h, w = hp, wp
        else:
            plan.append(dict(layer=i, cin=cin, cout=cout, kind='mean',
                             ho=ho, wo=wo))
    return plan


def _pack_conv(w_oihw, b, wrep):
    """(Cout,Cin,3,3) -> block-diagonal (9*wrep*Cin, wrep*Cout) weight whose
    output lanes are ordered (out_col, out_channel); bias tiled to match."""
    cout, cin = w_oihw.shape[0], w_oihw.shape[1]
    w9 = jnp.transpose(w_oihw, (2, 3, 1, 0)).reshape(9, cin, cout)
    eye = jnp.eye(wrep, dtype=w9.dtype)
    wblk = jnp.einsum('tco,wj->twcjo', w9, eye).reshape(9 * wrep * cin,
                                                        wrep * cout)
    bt = jnp.tile(b.reshape(1, cout), (1, wrep))
    return wblk.astype(COMPUTE_DTYPE), bt.astype(jnp.float32)


def pack_title_weights(p):
    wt = jnp.zeros((5 * EMBED_DIM, 32), jnp.float32)
    bts = []
    for g, k in enumerate((2, 3, 4, 5)):
        w = p[f'title_conv{k}_w']                           # (8, 32, k)
        w2d = jnp.transpose(w, (2, 1, 0)).reshape(k * EMBED_DIM, 8)
        wt = wt.at[:k * EMBED_DIM, 8 * g:8 * g + 8].set(w2d)
        bts.append(p[f'title_conv{k}_b'].reshape(1, 8))
    return wt.astype(COMPUTE_DTYPE), jnp.concatenate(bts, 1).astype(jnp.float32)


def pack_head_weights(p):
    # stage 1: x = [ue32|ge16|ae16|je16|me32|ce32|tf32|pp64] (240 lanes)
    w1 = jnp.zeros((240, 288), jnp.float32)
    w1 = w1.at[0:32, 0:32].set(p['user_fc_w'])
    w1 = w1.at[32:48, 32:64].set(p['gender_fc_w'])
    w1 = w1.at[48:64, 64:96].set(p['age_fc_w'])
    w1 = w1.at[64:80, 96:128].set(p['job_fc_w'])
    w1 = w1.at[80:112, 128:160].set(p['movie_fc_w'])
    w1 = w1.at[112:144, 160:192].set(p['category_fc_w'])
    # identity pass-through: title_f = max(ReLU) >= 0, poster_pooled = mean(ReLU) >= 0,
    # so the stage-1 ReLU is a no-op on them (documented invariant).
    w1 = w1.at[144:176, 192:224].set(jnp.eye(32))
    w1 = w1.at[176:240, 224:288].set(jnp.eye(64))
    b1 = jnp.concatenate([p['user_fc_b'], p['gender_fc_b'], p['age_fc_b'],
                          p['job_fc_b'], p['movie_fc_b'], p['category_fc_b'],
                          jnp.zeros((1, 96), jnp.float32)], axis=1)   # (1, 288)
    # stage 2: 3 blocks of 256 lanes (200 used, 56 zero) -> aligned slices
    w2 = jnp.zeros((288, 768), jnp.float32)
    w2 = w2.at[0:128, 0:200].set(p['user_final_w'])
    w2 = w2.at[128:224, 256:456].set(p['movie_final_w'])
    w2 = w2.at[224:288, 512:712].set(p['poster_fc_w'])
    b2 = jnp.zeros((1, 768), jnp.float32)
    b2 = b2.at[:, 0:200].set(p['user_final_b'])
    b2 = b2.at[:, 256:456].set(p['movie_final_b'])
    b2 = b2.at[:, 512:712].set(p['poster_fc_b'])
    return (w1.astype(COMPUTE_DTYPE), b1, w2.astype(COMPUTE_DTYPE), b2)


def pack_params(p, poster_hw):
    H, W = poster_hw
    packed = {}
    packed['title_w'], packed['title_b'] = pack_title_weights(p)
    for spec in _poster_plan(H, W):
        i = spec['layer']
        wrep = spec['wp'] if spec['kind'] == 'pool' else spec['wo']
        packed[f'conv{i}_w'], packed[f'conv{i}_b'] = _pack_conv(
            p[f'poster_conv{i}_w'], p[f'poster_conv{i}_b'], wrep)
    (packed['head_w1'], packed['head_b1'],
     packed['head_w2'], packed['head_b2']) = pack_head_weights(p)
    return packed


# ---------------------------------------------------------------------------
# Pure-JAX references (unpacked weights, same dtype policy)
# ---------------------------------------------------------------------------
def maxpool2x2(x):                        # NHWC, floor semantics like PyTorch
    B, H, W, C = x.shape
    H2, W2 = H // 2, W // 2
    x = x[:, :2 * H2, :2 * W2, :]
    return jnp.max(x.reshape(B, H2, 2, W2, 2, C), axis=(2, 4))


def _conv_reference_layer(x, w_oihw, bias, pool):
    dt = COMPUTE_DTYPE
    w_hwio = jnp.transpose(w_oihw, (2, 3, 1, 0)).astype(dt)
    y = jax.lax.conv_general_dilated(
        x.astype(dt), w_hwio, window_strides=(2, 2),
        padding=((1, 1), (1, 1)),
        dimension_numbers=('NHWC', 'HWIO', 'NHWC'),
        preferred_element_type=jnp.float32)
    y = jnp.maximum(y + bias.reshape(1, 1, 1, -1), 0.0)
    if pool:
        return maxpool2x2(y).astype(dt)
    return jnp.mean(y, axis=(1, 2))                       # (B, C) f32


def _title_reference(title_e, p):
    dt = COMPUTE_DTYPE
    B, T, E = title_e.shape
    feats = []
    for k in (2, 3, 4, 5):
        L = T - k + 1
        win = jnp.stack([title_e[:, j:j + L, :] for j in range(k)], axis=2)
        win = win.reshape(B * L, k * E)
        w2d = jnp.transpose(p[f'title_conv{k}_w'], (2, 1, 0)).reshape(k * E, 8)
        y = (jnp.dot(win.astype(dt), w2d.astype(dt),
                     preferred_element_type=jnp.float32)
             + p[f'title_conv{k}_b'].reshape(1, 8))
        y = jnp.maximum(y, 0.0).reshape(B, L, 8)
        feats.append(jnp.max(y, axis=1))
    return jnp.concatenate(feats, axis=1)


def _head_reference(ue, ge, ae, je, me, ce, tf, pp, p):
    dt = COMPUTE_DTYPE
    relu = lambda v: jnp.maximum(v, 0.0)
    dot = lambda a, w: jnp.dot(a.astype(dt), w.astype(dt),
                               preferred_element_type=jnp.float32)
    uf = relu(dot(ue, p['user_fc_w']) + p['user_fc_b'])
    gf = relu(dot(ge, p['gender_fc_w']) + p['gender_fc_b'])
    af = relu(dot(ae, p['age_fc_w']) + p['age_fc_b'])
    jf = relu(dot(je, p['job_fc_w']) + p['job_fc_b'])
    mf = relu(dot(me, p['movie_fc_w']) + p['movie_fc_b'])
    cf = relu(dot(ce, p['category_fc_w']) + p['category_fc_b'])
    user_features = jnp.tanh(
        dot(jnp.concatenate([uf, gf, af, jf], 1), p['user_final_w'])
        + p['user_final_b'])
    movie_pre = (dot(jnp.concatenate([mf, cf, tf], 1), p['movie_final_w'])
                 + p['movie_final_b'])
    poster_pre = dot(pp, p['poster_fc_w']) + p['poster_fc_b']
    movie_features = jnp.tanh(movie_pre) + poster_pre
    return jnp.sum(user_features * movie_features, axis=1, keepdims=True)


# ---------------------------------------------------------------------------
# Parameter init (PyTorch-like layout: conv OIHW / (O,I,k); linear (in,out))
# ---------------------------------------------------------------------------
def init_params(key, n_users, n_movies, n_genders, n_ages, n_jobs,
                n_categories, n_titles, embed_dim=EMBED_DIM):
    keys = iter(jax.random.split(key, 64))

    def emb(n, d):
        return jax.random.normal(next(keys), (n, d), jnp.float32) * 0.1

    def lin(din, dout):
        s = float(din) ** -0.5
        w = jax.random.uniform(next(keys), (din, dout), jnp.float32, -s, s)
        b = jax.random.uniform(next(keys), (1, dout), jnp.float32, -s, s)
        return w, b

    def conv2d(cin, cout):
        s = float(cin * 9) ** -0.5
        w = jax.random.uniform(next(keys), (cout, cin, 3, 3), jnp.float32, -s, s)
        b = jax.random.uniform(next(keys), (cout,), jnp.float32, -s, s)
        return w, b

    def conv1d(cin, cout, k):
        s = float(cin * k) ** -0.5
        w = jax.random.uniform(next(keys), (cout, cin, k), jnp.float32, -s, s)
        b = jax.random.uniform(next(keys), (cout,), jnp.float32, -s, s)
        return w, b

    p = {}
    p['user_emb'] = emb(n_users, embed_dim)
    p['movie_emb'] = emb(n_movies, embed_dim)
    p['gender_emb'] = emb(n_genders, embed_dim // 2)
    p['age_emb'] = emb(n_ages, embed_dim // 2)
    p['job_emb'] = emb(n_jobs, embed_dim // 2)
    p['category_emb'] = emb(n_categories, embed_dim)
    p['title_emb'] = emb(n_titles, embed_dim)
    for k in (2, 3, 4, 5):
        p[f'title_conv{k}_w'], p[f'title_conv{k}_b'] = conv1d(embed_dim, 8, k)
    for idx, (cin, cout) in enumerate([(3, 16), (16, 32), (32, 64)]):
        p[f'poster_conv{idx}_w'], p[f'poster_conv{idx}_b'] = conv2d(cin, cout)
    p['poster_fc_w'], p['poster_fc_b'] = lin(64, 200)
    p['user_fc_w'], p['user_fc_b'] = lin(embed_dim, embed_dim)
    p['gender_fc_w'], p['gender_fc_b'] = lin(embed_dim // 2, embed_dim)
    p['age_fc_w'], p['age_fc_b'] = lin(embed_dim // 2, embed_dim)
    p['job_fc_w'], p['job_fc_b'] = lin(embed_dim // 2, embed_dim)
    p['movie_fc_w'], p['movie_fc_b'] = lin(embed_dim, embed_dim)
    p['category_fc_w'], p['category_fc_b'] = lin(embed_dim, embed_dim)
    p['user_final_w'], p['user_final_b'] = lin(4 * embed_dim, 200)
    p['movie_final_w'], p['movie_final_b'] = lin(3 * embed_dim, 200)
    return p


# ---------------------------------------------------------------------------
# Forward pass
# TODO(synk): embedding-table gathers and the per-layer parity-split pad/
# reshape/transpose stay in XLA glue; fully fusing the 3-conv poster tower
# into one pallas_call (removing the two tiny HBM round trips) is possible
# but left out to keep in-kernel layout ops minimal.
# ---------------------------------------------------------------------------
def forward(params, packed, user_id, movie_id, gender, age, job_id,
            movie_categories, movie_titles, poster_img, use_pallas=True):
    p = params
    dt = COMPUTE_DTYPE

    # ---- embedding gathers (XLA glue) ----
    user_e = p['user_emb'][user_id]                               # (B, 32)
    movie_e = p['movie_emb'][movie_id]                            # (B, 32)
    gender_e = p['gender_emb'][gender]                            # (B, 16)
    age_e = p['age_emb'][age]                                     # (B, 16)
    job_e = p['job_emb'][job_id]                                  # (B, 16)
    cat_e = jnp.sum(p['category_emb'][movie_categories], axis=1)  # (B, 32)
    title_e = p['title_emb'][movie_titles]                        # (B, T, 32)

    H, W = poster_img.shape[2], poster_img.shape[3]
    x = jnp.transpose(poster_img, (0, 2, 3, 1))                   # NCHW -> NHWC
    plan = _poster_plan(H, W)

    if not use_pallas:
        title_f = _title_reference(title_e, p)
        for spec in plan:
            i = spec['layer']
            x = _conv_reference_layer(x, p[f'poster_conv{i}_w'],
                                      p[f'poster_conv{i}_b'],
                                      pool=(spec['kind'] == 'pool'))
        poster_pooled = x                                         # (B, 64) f32
        return _head_reference(user_e, gender_e, age_e, job_e, movie_e, cat_e,
                               title_f, poster_pooled, p)

    # ---- title text-CNN (one fused kernel) ----
    title_pad = jnp.pad(title_e.astype(dt), ((0, 0), (0, 4), (0, 0)))
    title_f = title_cnn(title_pad, packed['title_w'], packed['title_b'])

    # ---- poster CNN tower (batch-tiled, pools / mean fused in-kernel) ----
    poster_pooled = None
    for spec in plan:
        i = spec['layer']
        if spec['kind'] == 'pool':
            x = _conv_pool_call(x, packed[f'conv{i}_w'], packed[f'conv{i}_b'],
                                spec['hp'], spec['wp'])
        else:
            poster_pooled = _conv_mean_call(x, packed[f'conv{i}_w'],
                                            packed[f'conv{i}_b'],
                                            spec['ho'], spec['wo'])

    # ---- fused FC head ----
    slab = jnp.concatenate([user_e, gender_e, age_e, job_e, movie_e, cat_e,
                            title_f, poster_pooled], axis=1).astype(dt)  # (B,240)
    return fused_head(slab, packed['head_w1'], packed['head_b1'],
                      packed['head_w2'], packed['head_b2'])


# ---------------------------------------------------------------------------
if __name__ == "__main__":
    key = jax.random.PRNGKey(0)
    kp, k1, k2, k3, k4, k5, k6, k7, k8 = jax.random.split(key, 9)

    n_users, n_movies = 100, 200
    n_genders, n_ages, n_jobs = 2, 7, 21
    n_categories, n_titles = 19, 500
    B, n_cat, T = 2, 6, TITLE_DIM
    H = W = 32

    params = init_params(kp, n_users, n_movies, n_genders, n_ages, n_jobs,
                         n_categories, n_titles)
    packed = pack_params(params, (H, W))      # packing hoisted out of forward

    user_id = jax.random.randint(k1, (B,), 0, n_users, jnp.int32)
    movie_id = jax.random.randint(k2, (B,), 0, n_movies, jnp.int32)
    gender = jax.random.randint(k3, (B,), 0, n_genders, jnp.int32)
    age = jax.random.randint(k4, (B,), 0, n_ages, jnp.int32)
    job_id = jax.random.randint(k5, (B,), 0, n_jobs, jnp.int32)
    movie_categories = jax.random.randint(k6, (B, n_cat), 0, n_categories, jnp.int32)
    movie_titles = jax.random.randint(k7, (B, T), 0, n_titles, jnp.int32)
    poster_img = jax.random.normal(k8, (B, 3, H, W), jnp.float32)

    pred = forward(params, packed, user_id, movie_id, gender, age, job_id,
                   movie_categories, movie_titles, poster_img, use_pallas=True)
    pred = jax.block_until_ready(pred)

    ref = forward(params, packed, user_id, movie_id, gender, age, job_id,
                  movie_categories, movie_titles, poster_img, use_pallas=False)
    ref = jax.block_until_ready(ref)

    assert pred.shape == (B, 1)
    assert bool(jnp.all(jnp.isfinite(pred)))
    assert jnp.allclose(pred, ref, rtol=2e-2, atol=2e-2), (pred, ref)
    print("KERNEL_OK")
</pallas_src>

<mosaic_0001>
module attributes {stable_mosaic.version = 11 : i64} {
  func.func @kernel(%arg0: i32, %arg1: memref<2x19x32xbf16, #tpu.memory_space<vmem>>, %arg2: memref<160x32xbf16, #tpu.memory_space<vmem>>, %arg3: memref<1x32xf32, #tpu.memory_space<vmem>>, %arg4: memref<2x32xf32, #tpu.memory_space<vmem>>) attributes {dimension_semantics = [#tpu.dimension_semantics<parallel>], iteration_bounds = array<i64: 1>, scalar_prefetch = 0 : i64, scratch_operands = 0 : i64, tpu.core_type = #tpu.core_type<tc>, window_params = [{transform_indices = @transform_0, window_bounds = array<i64: 2, 19, 32>}, {pipeline_mode = #tpu.pipeline_mode<synchronous>, transform_indices = @transform_1, window_bounds = array<i64: 160, 32>}, {pipeline_mode = #tpu.pipeline_mode<synchronous>, transform_indices = @transform_2, window_bounds = array<i64: 1, 32>}, {transform_indices = @transform_3, window_bounds = array<i64: 2, 32>}]} {
    %c0 = arith.constant 0 : index
    %c0_0 = arith.constant 0 : index
    %c0_1 = arith.constant 0 : index
    %0 = vector.load %arg1[%c0, %c0_0, %c0_1] : memref<2x19x32xbf16, #tpu.memory_space<vmem>>, vector<2x15x32xbf16>
    %1 = vector.shape_cast %0 : vector<2x15x32xbf16> to vector<30x32xbf16>
    %c0_2 = arith.constant 0 : index
    %c1 = arith.constant 1 : index
    %c0_3 = arith.constant 0 : index
    %2 = vector.load %arg1[%c0_2, %c1, %c0_3] : memref<2x19x32xbf16, #tpu.memory_space<vmem>>, vector<2x15x32xbf16>
    %3 = vector.shape_cast %2 : vector<2x15x32xbf16> to vector<30x32xbf16>
    %c0_4 = arith.constant 0 : index
    %c2 = arith.constant 2 : index
    %c0_5 = arith.constant 0 : index
    %4 = vector.load %arg1[%c0_4, %c2, %c0_5] : memref<2x19x32xbf16, #tpu.memory_space<vmem>>, vector<2x15x32xbf16>
    %5 = vector.shape_cast %4 : vector<2x15x32xbf16> to vector<30x32xbf16>
    %c0_6 = arith.constant 0 : index
    %c3 = arith.constant 3 : index
    %c0_7 = arith.constant 0 : index
    %6 = vector.load %arg1[%c0_6, %c3, %c0_7] : memref<2x19x32xbf16, #tpu.memory_space<vmem>>, vector<2x15x32xbf16>
    %7 = vector.shape_cast %6 : vector<2x15x32xbf16> to vector<30x32xbf16>
    %c0_8 = arith.constant 0 : index
    %c4 = arith.constant 4 : index
    %c0_9 = arith.constant 0 : index
    %8 = vector.load %arg1[%c0_8, %c4, %c0_9] : memref<2x19x32xbf16, #tpu.memory_space<vmem>>, vector<2x15x32xbf16>
    %9 = vector.shape_cast %8 : vector<2x15x32xbf16> to vector<30x32xbf16>
    %10 = tpu.concatenate %1, %3, %5, %7, %9 in 1 : vector<30x32xbf16>, vector<30x32xbf16>, vector<30x32xbf16>, vector<30x32xbf16>, vector<30x32xbf16> -> vector<30x160xbf16>
    %c0_10 = arith.constant 0 : index
    %c0_11 = arith.constant 0 : index
    %11 = vector.load %arg2[%c0_10, %c0_11] : memref<160x32xbf16, #tpu.memory_space<vmem>>, vector<160x32xbf16>
    %cst = arith.constant dense<0.000000e+00> : vector<30x32xf32>
    %12 = tpu.matmul %10, %11, %cst {dimension_numbers = #tpu.dot_dimension_numbers<[1], [0], [0], [1], [0, 0, 1, 1], [], []>} : vector<30x160xbf16>, vector<160x32xbf16>, vector<30x32xf32> -> vector<30x32xf32>
    %c0_12 = arith.constant 0 : index
    %c0_13 = arith.constant 0 : index
    %13 = vector.load %arg3[%c0_12, %c0_13] : memref<1x32xf32, #tpu.memory_space<vmem>>, vector<1x32xf32>
    %14 = vector.broadcast %13 : vector<1x32xf32> to vector<30x32xf32>
    %15 = arith.addf %12, %14 : vector<30x32xf32>
    %cst_14 = arith.constant 0.000000e+00 : f32
    %16 = vector.broadcast %cst_14 : f32 to vector<30x32xf32>
    %17 = arith.maximumf %15, %16 : vector<30x32xf32>
    %18 = vector.shape_cast %17 : vector<30x32xf32> to vector<2x15x32xf32>
    %19 = vector.extract_strided_slice %18 {offsets = [0, 0, 0], sizes = [2, 14, 8], strides = [1, 1, 1]} : vector<2x15x32xf32> to vector<2x14x8xf32>
    %cst_15 = arith.constant dense<0xFF800000> : vector<2x8xf32>
    %20 = vector.multi_reduction <maximumf>, %19, %cst_15 [1] : vector<2x14x8xf32> to vector<2x8xf32>
    %21 = vector.extract_strided_slice %18 {offsets = [0, 0, 8], sizes = [2, 13, 8], strides = [1, 1, 1]} : vector<2x15x32xf32> to vector<2x13x8xf32>
    %cst_16 = arith.constant dense<0xFF800000> : vector<2x8xf32>
    %22 = vector.multi_reduction <maximumf>, %21, %cst_16 [1] : vector<2x13x8xf32> to vector<2x8xf32>
    %23 = vector.extract_strided_slice %18 {offsets = [0, 0, 16], sizes = [2, 12, 8], strides = [1, 1, 1]} : vector<2x15x32xf32> to vector<2x12x8xf32>
    %cst_17 = arith.constant dense<0xFF800000> : vector<2x8xf32>
    %24 = vector.multi_reduction <maximumf>, %23, %cst_17 [1] : vector<2x12x8xf32> to vector<2x8xf32>
    %25 = vector.extract_strided_slice %18 {offsets = [0, 0, 24], sizes = [2, 11, 8], strides = [1, 1, 1]} : vector<2x15x32xf32> to vector<2x11x8xf32>
    %cst_18 = arith.constant dense<0xFF800000> : vector<2x8xf32>
    %26 = vector.multi_reduction <maximumf>, %25, %cst_18 [1] : vector<2x11x8xf32> to vector<2x8xf32>
    %27 = tpu.concatenate %20, %22, %24, %26 in 1 : vector<2x8xf32>, vector<2x8xf32>, vector<2x8xf32>, vector<2x8xf32> -> vector<2x32xf32>
    %c0_19 = arith.constant 0 : index
    %c0_20 = arith.constant 0 : index
    %28 = vector.load %arg4[%c0_19, %c0_20] : memref<2x32xf32, #tpu.memory_space<vmem>>, vector<2x32xf32>
    tpu.vector_store %arg4[%c0_19, %c0_20], %27 {strides = array<i32>} : memref<2x32xf32, #tpu.memory_space<vmem>>, vector<2x32xf32>,
    return
  }
  func.func @transform_0(%arg0: i32) -> (i32, i32, i32) {
    %c0_i32 = arith.constant 0 : i32
    %c0_i32_0 = arith.constant 0 : i32
    %c0_i32_1 = arith.constant 0 : i32
    return %arg0, %c0_i32, %c0_i32_0 : i32, i32, i32
  }
  func.func @transform_1(%arg0: i32) -> (i32, i32) {
    %c0_i32 = arith.constant 0 : i32
    %c0_i32_0 = arith.constant 0 : i32
    %c0_i32_1 = arith.constant 0 : i32
    return %c0_i32, %c0_i32_0 : i32, i32
  }
  func.func @transform_2(%arg0: i32) -> (i32, i32) {
    %c0_i32 = arith.constant 0 : i32
    %c0_i32_0 = arith.constant 0 : i32
    %c0_i32_1 = arith.constant 0 : i32
    return %c0_i32, %c0_i32_0 : i32, i32
  }
  func.func @transform_3(%arg0: i32) -> (i32, i32) {
    %c0_i32 = arith.constant 0 : i32
    %c0_i32_0 = arith.constant 0 : i32
    return %arg0, %c0_i32 : i32, i32
  }
}

</mosaic_0001>

<bundles_post_ra>
// kernel: tpu_custom_call.1
= control target key start
LH: loop header
LB: loop body
LE: loop exit
PB: predicated region body
PF: predicated region fallthrough
CT: control target
= control target key end

     0   :  { %v35_v1 = vlaneseq  ;;  %v1744_v2 = vmov 1966171168   ;;  %v1745_v14 = vmov 0   ;;  %s2201_s0 = inlined_call_operand.vmem [shape: bf16[2,19,32], index: 0, kind: input, shape index: {}]   ;;  %s2202_s1 = inlined_call_operand.vmem [shape: bf16[160,32], index: 1, kind: input, shape index: {}]   ;;  %s2203_s2 = inlined_call_operand.vmem [shape: f32[1,32], index: 2, kind: input, shape index: {}]   ;;  %s2204_s3 = inlined_call_operand.hbm [shape: f32[2,32], index: 3, kind: output, shape index: {}]  }
   0x1   :  { %v1623_v0 = vld.sshfl [vmem:[%s2201_s0 + $0x4] sm:$0x33 pattern:$0x75316420]  ;;  %v33_v3 = vunpack.c.l.s4 %v1744_v2  ;;  %1014 = vmatprep.subr.bf16.mxu0 %v1745_v14  ;;  %1684 = vmatprep.subr.bf16.mxu1 %v1745_v14  ;;  %v1711_v27 = vld [vmem:[%s2202_s1 + $0x8] sm:$0xff]   ;;  %v1712_v37 = vld [vmem:[%s2202_s1 + $0x10] sm:$0xff]  }
   0x2   :  { %v1626_v4 = vld.sshfl [vmem:[%s2201_s0] sm:$0x32 pattern:$0x75316420]  ;;  %v36_v5 = vshrl.u32 %v35_v1, 7  ;;  %v55_v7 = vcombine.high %v1623_v0, %v1623_v0  ;;  %v1713_v54 = vld [vmem:[%s2202_s1 + $0x18] sm:$0xff]  }
   0x3   :  { %v34_v6 = vunpack.c.0.s8 %v33_v3  ;;  %v1627_v8 = vld.sshfl [vmem:[%s2201_s0 + $0x8] sm:$0x1 pattern:$0x75316420]  ;;  %v167_v10 = vcombine.high %v1626_v4, %v1626_v4  ;;  %v1710_v11 = vld [vmem:[%s2202_s1] sm:$0xff]  }
   0x4   :  { %v1782_v9 = vld.sshfl [vmem:[%s2201_s0 + $0xc] sm:$0x32 pattern:$0x75316420]  ;;  %1015 = vmatpush1.bf16.msra.mxu0 %v1710_v11  ;;  %1694 = vmatpush1.bf16.msra.mxu1 %v1710_v11 }
   0x5   :  { %v205_v12 = vcombine.high %v1782_v9, %v1782_v9  ;;  %v1624_v13 = vld.sshfl [vmem:[%s2201_s0 + $0xc] sm:$0x33 pattern:$0x75316420]  ;;  %v1794_v15 = vsub.s32 %v34_v6, %v36_v5  ;;  %1016 = vmatprep.subr.bf16.mxu0 %v1745_v14  ;;  %1685 = vmatprep.subr.bf16.mxu1 %v1745_v14 }
   0x6   :  { %v1625_v16 = vld.sshfl [vmem:[%s2201_s0 + $0x10] sm:$0x33 pattern:$0x75316420]  ;;  %v79_v17 = vcombine.high %v1624_v13, %v1624_v13 }
   0x7   :  { %v103_v18 = vcombine.high %v1625_v16, %v1625_v16  ;;  %v1802_v19 = vrot.slane %v1623_v0, %v1794_v15  ;;  %v1805_v20 = vrot.slane %v55_v7, %v1794_v15  ;;  %v174_v21 = vrot.slane %v1626_v4, %v1794_v15  ;;  %v1622_v36 = vld.sshfl [vmem:[%s2201_s0] sm:$0x33 pattern:$0x75316420] }
   0x8   :  { %v1809_v22 = vrot.slane %v167_v10, %v1794_v15  ;;  %v1812_v23 = vrot.slane %v1627_v8, %v1794_v15  ;;  %v1815_v24 = vrot.slane %v205_v12, %v1794_v15  ;;  %v1818_v25 = vrot.slane %v1624_v13, %v1794_v15  ;;  %1017 = vmatpush1.bf16.msra.mxu0 %v1711_v27 }
   0x9   :  { %v1821_v26 = vrot.slane %v79_v17, %v1794_v15  ;;  %v1828_v28 = vcombine.high %v1802_v19, %v1802_v19  ;;  %v1832_v29 = vcombine.high %v1805_v20, %v1805_v20  ;;  %v1834_v30 = vcombine.high %v174_v21, %v174_v21  ;;  %1695 = vmatpush1.bf16.msra.mxu1 %v1711_v27 }
   0xa   :  { %v1838_v31 = vcombine.high %v1809_v22, %v1809_v22  ;;  %v1650_v32 = vpack.i.b16 %v1815_v24, %v1812_v23  ;;  %v1844_v33 = vcombine.high %v1818_v25, %v1818_v25  ;;  %v1851_v35 = vrot.slane %v1625_v16, %v1794_v15  ;;  %1018 = vmatprep.subr.bf16.mxu0 %v1745_v14 }
   0xb   :  { %v1848_v34 = vcombine.high %v1821_v26, %v1821_v26  ;;  %v603_v38 = vcombine.low %v1809_v22, %v1834_v30  ;;  %v605_v40 = vcombine.low %v1805_v20, %v1828_v28  ;;  %v1866_v41 = vrot.slane %v103_v18, %v1794_v15  ;;  %1686 = vmatprep.subr.bf16.mxu1 %v1745_v14 }
   0xc   :  { %v604_v39 = vcombine.low %v1838_v31, %v1802_v19  ;;  %v606_v42 = vcombine.low %v1832_v29, %v1650_v32  ;;  %v1871_v43 = vcombine.high %v1851_v35, %v1851_v35  ;;  %v542_v44 = vcombine.low %v1821_v26, %v1844_v33  ;;  %1019 = vmatpush1.bf16.msra.mxu0 %v1712_v37 }
   0xd   :  { %v543_v45 = vcombine.low %v1848_v34, %v1851_v35  ;;  %v613_v46 = vrot.slane %v603_v38, %v1794_v15  ;;  %v627_v48 = vrot.slane %v605_v40, %v1794_v15  ;;  %v1883_v49 = vcombine.high %v1866_v41, %v1866_v41  ;;  %1696 = vmatpush1.bf16.msra.mxu1 %v1712_v37 }
   0xe   :  { %v620_v47 = vrot.slane %v604_v39, %v1794_v15  ;;  %v634_v50 = vrot.slane %v606_v42, %v1794_v15  ;;  %v544_v51 = vcombine.low %v1866_v41, %v1871_v43  ;;  %v551_v52 = vrot.slane %v542_v44, %v1794_v15  ;;  %1020 = vmatprep.subr.bf16.mxu0 %v1745_v14 }
   0xf   :  { %v558_v53 = vrot.slane %v543_v45, %v1794_v15  ;;  %v572_v56 = vrot.slane %v1883_v49, %v1794_v15  ;;  %v31_v57 = vcombine.high %v1622_v36, %v1622_v36  ;;  %v1897_v58 = vrot.slane %v1622_v36, %v1794_v15  ;;  %1687 = vmatprep.subr.bf16.mxu1 %v1745_v14 }
  0x10   :  { %v635_v55 = vcombine.low %v613_v46, %v620_v47  ;;  %v636_v59 = vcombine.low %v627_v48, %v634_v50  ;;  %v565_v60 = vrot.slane %v544_v51, %v1794_v15  ;;  %v129_v62 = vunpack.i.h.s16 %v1802_v19 }
  0x11   :  { %v573_v61 = vcombine.low %v551_v52, %v558_v53 }
  0x12   :  { %8 = vsyncpa [#allocation3], 0  ;;  %v643_v63 = vrot.slane %v635_v55, %v1794_v15  ;;  %v1905_v0 = vrot.slane %v31_v57, %v1794_v15  ;;  %v46_v1 = vcombine.high %v1897_v58, %v1897_v58  ;;  %v121_v2 = vunpack.i.h.s16 %v1897_v58  ;;  %1021 = vmatpush1.bf16.msra.mxu0 %v1713_v54  ;;  %1697 = vmatpush1.bf16.msra.mxu1 %v1713_v54  ;;  %v1714_v12 = vld [vmem:[%s2202_s1 + $0x20] sm:$0xff]   ;;  %s1746_s9 = smov 64   ;;  %v1715_v47 = vld [vmem:[%s2202_s1 + $0x28] sm:$0xff]   ;;  %s1747_s12 = smov 32  }
  0x13   :  { %v650_v3 = vrot.slane %v636_v59, %v1794_v15  ;;  %v574_v4 = vcombine.low %v565_v60, %v572_v56  ;;  %v581_v5 = vrot.slane %v573_v61, %v1794_v15  ;;  %v131_v6 = vunpack.i.h.s16 %v1805_v20  ;;  %1022 = vmatprep.subr.bf16.mxu0 %v1745_v14  ;;  %1688 = vmatprep.subr.bf16.mxu1 %v1745_v14  ;;  %s1748_s21 = smov 96  }
  0x14   :  { %v47_v7 = vcombine.high %v1905_v0, %v1905_v0  ;;  %v123_v8 = vunpack.i.h.s16 %v1905_v0  ;;  %v125_v10 = vunpack.i.h.s16 %v46_v1  ;;  %v133_v11 = vunpack.i.h.s16 %v1828_v28 }
  0x15   :  { %v651_v13 = vcombine.low %v643_v63, %v650_v3  ;;  %v588_v16 = vrot.slane %v574_v4, %v1794_v15  ;;  %v136_v17 = vunpack.i.h.s16 %v1818_v25  ;;  %v150_v18 = vunpack.i.h.s16 %v1832_v29 }
  0x16   :  { %v127_v21 = vunpack.i.h.s16 %v47_v7  ;;  %v1643_v27 = vpack.i.b16 %v1905_v0, %v121_v2  ;;  %v1644_v32 = vpack.i.b16 %v46_v1, %v123_v8  ;;  %v1645_v36 = vpack.i.b16 %v47_v7, %v125_v10  ;;  %1023 = vmatpush1.bf16.msra.mxu0 %v1714_v12  ;;  %1698 = vmatpush1.bf16.msra.mxu1 %v1714_v12  ;;  %v1716_v2 = vld [vmem:[%s2202_s1 + $0x30] sm:$0xff]  }
  0x17   :  { %700 = vrot.lane.b32.xlu0 %v651_v13, %s1746_s9  ;;  %v589_v37 = vcombine.low %v581_v5, %v588_v16  ;;  %v1647_v38 = vpack.i.b16 %v1805_v20, %v129_v62  ;;  %v1648_v39 = vpack.i.b16 %v1828_v28, %v131_v6  ;;  %v1649_v40 = vpack.i.b16 %v1832_v29, %v133_v11 }
  0x18   :  { %v1646_v42 = vpack.i.b16 %v1802_v19, %v127_v21  ;;  %v485_v44 = vpack.i.b16 %v136_v17, %v150_v18  ;;  %v493_v45 = vcombine.low %v1643_v27, %v1644_v32  ;;  %v237_v46 = vunpack.i.h.s16 %v1809_v22  ;;  %1024 = vmatprep.subr.bf16.mxu0 %v1745_v14  ;;  %1689 = vmatprep.subr.bf16.mxu1 %v1745_v14 }
  0x19   :  { %592 = vrot.lane.b32.xlu1 %v589_v37, %s1747_s12  ;;  %v495_v48 = vcombine.low %v1647_v38, %v1648_v39  ;;  %v239_v50 = vunpack.i.h.s16 %v1834_v30  ;;  %v241_v51 = vunpack.i.h.s16 %v1838_v31  ;;  %v244_v52 = vunpack.i.h.s16 %v1815_v24 }
  0x1a   :  { %v494_v53 = vcombine.low %v1645_v36, %v1646_v42  ;;  %v496_v22 = vcombine.low %v1649_v40, %v485_v44  ;;  %v503_v54 = vrot.slane %v493_v45, %v1794_v15  ;;  %v250_v55 = vunpack.i.h.s16 %v1812_v23  ;;  %1025 = vmatpush1.bf16.msra.mxu0 %v1715_v47  ;;  %1699 = vmatpush1.bf16.msra.mxu1 %v1715_v47 }
  0x1b   :  { %v517_v56 = vrot.slane %v495_v48, %v1794_v15  ;;  %v1655_v57 = vpack.i.b16 %v1834_v30, %v237_v46  ;;  %v1656_v59 = vpack.i.b16 %v1838_v31, %v239_v50  ;;  %v1657_v60 = vpack.i.b16 %v1802_v19, %v241_v51  ;;  %1026 = vmatprep.subr.bf16.mxu0 %v1745_v14 }
  0x1c   :  { %v510_v61 = vrot.slane %v494_v53, %v1794_v15  ;;  %v524_v62 = vrot.slane %v496_v22, %v1794_v15  ;;  %v1658_v63 = vpack.i.b16 %v1812_v23, %v150_v18  ;;  %v708_v1 = vpack.i.b16 %v244_v52, %v250_v55  ;;  %v1629_v23 = vld.sshfl [vmem:[%s2201_s0 + $0x14] sm:$0x1 pattern:$0x75316420]  ;;  %1690 = vmatprep.subr.bf16.mxu1 %v1745_v14 }
  0x1d   :  { %v712_v3 = vcombine.low %v1655_v57, %v1656_v59  ;;  %v713_v4 = vcombine.low %v1657_v60, %v1647_v38  ;;  %v714_v5 = vcombine.low %v1648_v39, %v1649_v40  ;;  %v144_v30 = vunpack.i.h.s16 %v1851_v35  ;;  %v1717_v39 = vld [vmem:[%s2202_s1 + $0x38] sm:$0xff]   ;;  %v1718_v57 = vld [vmem:[%s2202_s1 + $0x40] sm:$0xff]  }
  0x1e   :  { %v525_v31 = vcombine.low %v503_v54, %v510_v61  ;;  %v526_v6 = vcombine.low %v517_v56, %v524_v62  ;;  %v715_v7 = vcombine.low %v1658_v63, %v708_v1  ;;  %v146_v8 = vunpack.i.h.s16 %v1866_v41  ;;  %1027 = vmatpush1.bf16.msra.mxu0 %v1716_v2  ;;  %1700 = vmatpush1.bf16.msra.mxu1 %v1716_v2 }
  0x1f   :  { %v722_v10 = vrot.slane %v712_v3, %v1794_v15  ;;  %v729_v11 = vrot.slane %v713_v4, %v1794_v15  ;;  %v736_v12 = vrot.slane %v714_v5, %v1794_v15  ;;  %v148_v13 = vunpack.i.h.s16 %v1871_v43  ;;  %1028 = vmatprep.subr.bf16.mxu0 %v1745_v14  ;;  %1691 = vmatprep.subr.bf16.mxu1 %v1745_v14 }
  0x20   :  { %v533_v16 = vrot.slane %v525_v31, %v1794_v15  ;;  %v540_v18 = vrot.slane %v526_v6, %v1794_v15  ;;  %v743_v21 = vrot.slane %v715_v7, %v1794_v15  ;;  %v151_v27 = vunpack.i.h.s16 %v1883_v49  ;;  %v1719_v7 = vld [vmem:[%s2202_s1 + $0x48] sm:$0xff]  }
  0x21   :  { %v744_v32 = vcombine.low %v722_v10, %v729_v11  ;;  %v212_v36 = vrot.slane %v1782_v9, %v1794_v15  ;;  %v221_v37 = vcombine.high %v1815_v24, %v1815_v24  ;;  %v235_v38 = vrot.slane %v1629_v23, %v1794_v15 }
  0x22   :  { %v541_v40 = vcombine.low %v533_v16, %v540_v18  ;;  %v745_v42 = vcombine.low %v736_v12, %v743_v21  ;;  %v1639_v44 = vpack.i.b16 %v1866_v41, %v144_v30  ;;  %v1640_v45 = vpack.i.b16 %v1871_v43, %v146_v8  ;;  %1029 = vmatpush1.bf16.msra.mxu0 %v1717_v39 }
  0x23   :  { %v752_v9 = vrot.slane %v744_v32, %v1794_v15  ;;  %v220_v46 = vcombine.high %v212_v36, %v212_v36  ;;  %v248_v47 = vunpack.i.h.s16 %v221_v37  ;;  %v1983_v48 = vpack.i.b16 %v1883_v49, %v148_v13  ;;  %1701 = vmatpush1.bf16.msra.mxu1 %v1717_v39  ;;  %1030 = vmatprep.subr.bf16.mxu0 %v1745_v14 }
  0x24   :  { %590 = vrot.lane.b32.xlu0 %v541_v40, %s1747_s12  ;;  %v759_v50 = vrot.slane %v745_v42, %v1794_v15  ;;  %v1654_v51 = vpack.i.b16 %v235_v38, %v151_v27  ;;  %v1659_v43 = vcombine.high %v212_v36, %v1815_v24  ;;  %v762_v53 = vcombine.low %v1851_v35, %v1866_v41 }
  0x25   :  { %v246_v22 = vunpack.i.h.s16 %v220_v46  ;;  %v1651_v54 = vpack.i.b16 %v220_v46, %v244_v52  ;;  %v1653_v55 = vpack.i.b16 %v1851_v35, %v248_v47  ;;  %v654_v56 = vcombine.low %v1640_v45, %v1983_v48  ;;  %1692 = vmatprep.subr.bf16.mxu1 %v1745_v14  ;;  %v1632_v47 = vld.sshfl [vmem:[%s2201_s0 + $0xc] sm:$0x22 pattern:$0x75316420] }
  0x26   :  { %v760_v59 = vcombine.low %v752_v9, %v759_v50  ;;  %v682_v60 = vrot.slane %v1654_v51, %v1794_v15  ;;  %v1660_v24 = vcombine.high %v1851_v35, %v1866_v41  ;;  %v770_v61 = vrot.slane %v1659_v43, %v1794_v15  ;;  %1031 = vmatpush1.bf16.msra.mxu0 %v1718_v57 }
  0x27   :  { %v1652_v52 = vpack.i.b16 %v221_v37, %v246_v22  ;;  %v653_v62 = vcombine.low %v1653_v55, %v1639_v44  ;;  %v675_v63 = vrot.slane %v654_v56, %v1794_v15  ;;  %v777_v1 = vrot.slane %v762_v53, %v1794_v15  ;;  %1702 = vmatpush1.bf16.msra.mxu1 %v1718_v57 }
  0x28   :  { %809 = vrot.lane.b32.xlu1 %v760_v59, %s1748_s21  ;;  %v784_v2 = vrot.slane %v1660_v24, %v1794_v15  ;;  %v791_v3 = vrot.slane %v235_v38, %v1794_v15  ;;  %v138_v41 = vunpack.i.h.s16 %v1821_v26  ;;  %v140_v4 = vunpack.i.h.s16 %v1844_v33  ;;  %1032 = vmatprep.subr.bf16.mxu0 %v1745_v14  ;;  %v1630_v38 = vld.sshfl [vmem:[%s2201_s0] sm:$0x22 pattern:$0x75316420] }
  0x29   :  { %v652_v5 = vcombine.low %v1651_v54, %v1652_v52  ;;  %v668_v30 = vrot.slane %v653_v62, %v1794_v15  ;;  %v684_v31 = vcombine.low %v675_v63, %v682_v60  ;;  %v792_v6 = vcombine.low %v770_v61, %v777_v1  ;;  %1693 = vmatprep.subr.bf16.mxu1 %v1745_v14  ;;  %v1633_v62 = vld.sshfl [vmem:[%s2201_s0 + $0x14] sm:$0x11 pattern:$0x75316420] }
  0x2a   :  { %v793_v8 = vcombine.low %v784_v2, %v791_v3  ;;  %v1635_v23 = vpack.i.b16 %v1821_v26, %v136_v17  ;;  %v1636_v10 = vpack.i.b16 %v1844_v33, %v138_v41  ;;  %v432_v11 = vcombine.low %v1639_v44, %v1640_v45  ;;  %1033 = vmatpush1.bf16.msra.mxu0 %v1719_v7 }
  0x2b   :  { %v661_v12 = vrot.slane %v652_v5, %v1794_v15  ;;  %v800_v13 = vrot.slane %v792_v6, %v1794_v15  ;;  %v460_v16 = vrot.slane %v1983_v48, %v1794_v15  ;;  %v698_v18 = vrot.slane %v684_v31, %v1794_v15  ;;  %1703 = vmatpush1.bf16.msra.mxu1 %v1719_v7 }
  0x2c   :  { %v807_v21 = vrot.slane %v793_v8, %v1794_v15  ;;  %v430_v32 = vcombine.low %v1635_v23, %v1636_v10  ;;  %v2027_v26 = vrot.slane %v432_v11, %v1794_v15  ;;  %v142_v17 = vunpack.i.h.s16 %v1848_v34 }
  0x2d   :  { %v683_v33 = vcombine.low %v661_v12, %v668_v30  ;;  %v1637_v36 = vpack.i.b16 %v1848_v34, %v140_v4  ;;  %v1634_v37 = vpack.i.b16 %v1818_v25, %v1832_v29  ;;  %v381_v42 = vcombine.low %v1897_v58, %v1905_v0  ;;  %v1631_v29 = vld.sshfl [vmem:[%s2201_s0 + $0x8] sm:$0x11 pattern:$0x75316420] }
  0x2e   :  { %v808_v39 = vcombine.low %v800_v13, %v807_v21  ;;  %v462_v40 = vcombine.low %v2027_v26, %v460_v16  ;;  %v1638_v44 = vpack.i.b16 %v1851_v35, %v142_v17  ;;  %v1642_v34 = vcombine.high %v1897_v58, %v1905_v0 }
  0x2f   :  { %v691_v14 = vrot.slane %v683_v33, %v1794_v15  ;;  %v383_v25 = vcombine.low %v1802_v19, %v1805_v20  ;;  %v439_v45 = vrot.slane %v430_v32, %v1794_v15  ;;  %v384_v9 = vcombine.low %v1828_v28, %v1634_v37 }
  0x30   :  { %811 = vrot.lane.b32.xlu1 %v808_v39, %s1748_s21  ;;  %v391_v46 = vrot.slane %v381_v42, %v1794_v15  ;;  %v267_v58 = vcombine.high %v1630_v38, %v1630_v38  ;;  %v431_v50 = vcombine.low %v1637_v36, %v1638_v44  ;;  %v398_v51 = vrot.slane %v1642_v34, %v1794_v15 }
  0x31   :  { %v699_v0 = vcombine.low %v691_v14, %v698_v18  ;;  %v405_v43 = vrot.slane %v383_v25, %v1794_v15  ;;  %v412_v53 = vrot.slane %v384_v9, %v1794_v15  ;;  %v274_v22 = vrot.slane %v1630_v38, %v1794_v15 }
  0x32   :  { %v281_v54 = vrot.slane %v267_v58, %v1794_v15  ;;  %v291_v28 = vcombine.high %v1631_v29, %v1631_v29  ;;  %v476_v55 = vrot.slane %v462_v40, %v1794_v15  ;;  %v446_v56 = vrot.slane %v431_v50, %v1794_v15 }
  0x33   :  { %702 = vrot.lane.b32.xlu0 %v699_v0, %s1746_s9  ;;  %v413_v57 = vcombine.low %v391_v46, %v398_v51  ;;  %v320_v59 = vrot.slane %v1632_v47, %v1794_v15  ;;  %v414_v60 = vcombine.low %v405_v43, %v412_v53  ;;  %v1667_v52 = vcombine.high %v1802_v19, %v1805_v20 }
  0x34   :  { %v305_v24 = vrot.slane %v291_v28, %v1794_v15  ;;  %v1666_v61 = vcombine.high %v274_v22, %v281_v54  ;;  %v461_v63 = vcombine.low %v439_v45, %v446_v56  ;;  %v298_v2 = vrot.slane %v1631_v29, %v1794_v15  ;;  %v1668_v28 = vld [vmem:[%s2203_s2] ss:$0 sm:$0xff]  ;;  %s1749_s2 = smov [#allocation2]  }
  0x35   :  { %v421_v1 = vrot.slane %v413_v57, %v1794_v15  ;;  %v328_v3 = vcombine.high %v320_v59, %v320_v59  ;;  %v428_v41 = vrot.slane %v414_v60, %v1794_v15  ;;  %v837_v5 = vrot.slane %v1667_v52, %v1794_v15  ;;  %s1614_s5 = sshll.u32 %s1749_s2, 4  ;;  %s1615_s5 = int_to_ptr.vmem [resolvable:$true] %s1614_s5 }
  0x36   :  { %v830_v4 = vrot.slane %v1666_v61, %v1794_v15  ;;  %v469_v30 = vrot.slane %v461_v63, %v1794_v15  ;;  %v313_v19 = vcombine.high %v1632_v47, %v1632_v47  ;;  %v337_v20 = vcombine.high %v1633_v62, %v1633_v62  ;;  %s1720_s6 = scalar_lea.vmem %s1615_s5, 32  ;;  %p1725_p1 = scmp.lt.s32.totalorder %s1615_s5, %s1615_s5 }
  0x37   :  { %v1661_v31 = vpack.i.b16 %v328_v3, %v305_v24  ;;  %v429_v6 = vcombine.low %v421_v1, %v428_v41  ;;  %v344_v8 = vrot.slane %v1633_v62, %v1794_v15  ;;  %v360_v23 = vunpack.i.h.s16 %v328_v3  ;;  %p1721_p0 = scmp.ne.s32.totalorder %s1615_s5, %s1720_s6  ;;  %p1726_p2 = scmp.lt.s32.totalorder %s1720_s6, %s1720_s6 }
  0x38   :  { %v845_v7 = vcombine.low %v830_v4, %v405_v43  ;;  %v477_v10 = vcombine.low %v469_v30, %v476_v55  ;;  %v327_v12 = vrot.slane %v313_v19, %v1794_v15  ;;  %v351_v13 = vrot.slane %v337_v20, %v1794_v15 }
  0x39   :  { %v823_v11 = vcombine.low %v298_v2, %v1661_v31  ;;  %v364_v16 = vunpack.i.h.s16 %v344_v8  ;;  %v1664_v18 = vpack.i.b16 %v344_v8, %v151_v27  ;;  %vm902_vm0 = vcmask 261120   ;;  %p1727_p3 = por %p1726_p2, %p1725_p1 }
  0x3a   :  { %v329_v32 = vcombine.high %v327_v12, %v327_v12  ;;  %v853_v37 = vrot.slane %v845_v7, %v1794_v15  ;;  %vm909_vm1 = vcmask 523264   ;;  %vm914_vm2 = vcmask 785408  }
  0x3b   :  { %v844_v21 = vrot.slane %v823_v11, %v1794_v15  ;;  %v1665_v33 = vpack.i.b16 %v351_v13, %v364_v16  ;;  %v863_v17 = vcombine.low %v1983_v48, %v1664_v18  ;;  %vm1490_vm3 = vcmask 130112   ;;  %p1728_p4 = pnand %p1727_p3, %p1721_p0 }
  0x3c   :  { %v362_v38 = vunpack.i.h.s16 %v329_v32  ;;  %v1662_v39 = vpack.i.b16 %v329_v32, %v360_v23  ;;  %vm1492_vm4 = vcmask 127040   ;;  %vm1438_vm5 = vcmask 64512  }
  0x3d   :  { %v846_v36 = vcombine.low %v837_v5, %v844_v21  ;;  %v877_v40 = vrot.slane %v863_v17, %v1794_v15  ;;  %v884_v42 = vrot.slane %v1665_v33, %v1794_v15  ;;  %vm1440_vm6 = vcmask 62464  }
  0x3e   :  { %v1663_v49 = vpack.i.b16 %v1851_v35, %v362_v38  ;;  %vm1512_vm7 = vcmask 195712   ;;  %vm1514_vm8 = vcmask 191616   ;;  %vm1564_vm9 = vcmask 261312  }
  0x3f   :  { %v860_v14 = vrot.slane %v846_v36, %v1794_v15  ;;  %v886_v34 = vcombine.low %v877_v40, %v884_v42  ;;  %vm1566_vm10 = vcmask 256192   ;;  %vm1586_vm11 = vcmask 1041409  }
  0x40   :  { %v862_v44 = vcombine.low %v1662_v39, %v1663_v49  ;;  %vm1602_vm12 = vcmask 130048   ;;  %vm1604_vm13 = vcmask 195584   ;;  %vm1606_vm14 = vcmask 254976  }
  0x41   :  { %v861_v27 = vcombine.low %v853_v37, %v860_v14  ;;  %v900_v29 = vrot.slane %v886_v34, %v1794_v15 }
  0x42   :  { %v870_v48 = vrot.slane %v862_v44, %v1794_v15 }
  0x43   :  { %1679 = vmatprep.mubr.msk.bf16.mxu0 %vm902_vm0, %v861_v27 }
  0x44   :  { %v885_v25 = vcombine.low %v870_v48, %v2027_v26 }
  0x46   :  { %v893_v45 = vrot.slane %v885_v25, %v1794_v15 }
  0x48   :  { %v901_v9 = vcombine.low %v893_v45, %v900_v29 }
  0x4a   :  { %1680 = vmatprep.mubr.msk.bf16.mxu1 %vm902_vm0, %v901_v9 }
  0x89   :  { %v701_v46 = vpop.permute.xlu0 %700 }
  0x8b   :  { %v593_v47 = vpop.permute.xlu1 %592 }
  0x8c   :  { %v908_v26 = vsel %vm902_vm0, %v477_v10, %v593_v47 }
  0x96   :  { %v591_v35 = vpop.permute.xlu0 %590 }
  0x97   :  { %v905_v58 = vsel %vm902_vm0, %v429_v6, %v591_v35 }
  0x98   :  { %v911_v0 = vsel %vm909_vm1, %v905_v58, %v701_v46 }
  0x9a   :  { %v810_v50 = vpop.permute.xlu1 %809 }
  0x9b   :  { %v916_v51 = vsel %vm914_vm2, %v911_v0, %v810_v50 }
  0x9c   :  { %1047 = vmatmul.mubr.bf16.vlgmr.msra.gmra.mrb[0].mxu0 %v916_v51 }
  0xa2   :  { %v812_v43 = vpop.permute.xlu1 %811 }
  0xa5   :  { %v703_v53 = vpop.permute.xlu0 %702 }
  0xa6   :  { %v913_v22 = vsel %vm909_vm1, %v908_v26, %v703_v53 }
  0xa7   :  { %v919_v54 = vsel %vm914_vm2, %v913_v22, %v812_v43 }
  0xa8   :  { %1055 = vmatmul.mubr.bf16.vlgmr.msra.gmra.mrb[0].mxu1 %v919_v54 }
 0x16f   :  { %v1048_v55 = vpop.f32.mrb[0].mxu0 }
 0x170   :  { %v1049_v56 = vadd.f32 %v1668_v28, %v1048_v55  ;;  %v1050_v57 = vpop.f32.mrb[1].mxu0 }
 0x171   :  { %v1051_v59 = vpop.f32.mrb[2].mxu0 }
 0x172   :  { %v1063_v60 = vmax.f32 %v1049_v56, 0.0  ;;  %v1052_v24 = vadd.f32 %v1668_v28, %v1051_v59  ;;  %v1053_v61 = vpop.f32.mrb[3].mxu0 }
 0x174   :  { %v1071_v52 = vcombine.high %v1063_v60, %v1063_v60  ;;  %v1078_v62 = vrot.slane %v1063_v60, %v1794_v15  ;;  %v1064_v63 = vmax.f32 %v1052_v24, 0.0 }
 0x176   :  { %v1085_v1 = vrot.slane %v1071_v52, %v1794_v15  ;;  %v1086_v2 = vcombine.high %v1078_v62, %v1078_v62  ;;  %v1120_v3 = vcombine.high %v1064_v63, %v1064_v63  ;;  %v1127_v41 = vrot.slane %v1064_v63, %v1794_v15 }
 0x177   :  { %v1094_v5 = vrot.slane %v1078_v62, %v1794_v15 }
 0x178   :  { %v1087_v4 = vcombine.high %v1085_v1, %v1085_v1  ;;  %v1108_v30 = vrot.slane %v1086_v2, %v1794_v15  ;;  %v1134_v31 = vrot.slane %v1120_v3, %v1794_v15  ;;  %v1101_v19 = vrot.slane %v1085_v1, %v1794_v15 }
 0x179   :  { %v1135_v20 = vcombine.high %v1127_v41, %v1127_v41  ;;  %v1143_v6 = vrot.slane %v1127_v41, %v1794_v15 }
 0x17a   :  { %v1115_v7 = vrot.slane %v1087_v4, %v1794_v15  ;;  %v1256_v8 = vcombine.low %v1094_v5, %v1108_v30  ;;  %v1681_v23 = vcombine.high %v1094_v5, %v1108_v30  ;;  %v1136_v10 = vcombine.high %v1134_v31, %v1134_v31 }
 0x17b   :  { %v1150_v11 = vrot.slane %v1134_v31, %v1794_v15  ;;  %v1157_v12 = vrot.slane %v1135_v20, %v1794_v15  ;;  %v1056_v13 = vpop.f32.mrb[0].mxu1  ;;  %v1165_v14 = vcombine.high %v1143_v6, %v1143_v6 }
 0x17c   :  { %v1258_v16 = vcombine.low %v1101_v19, %v1115_v7  ;;  %v1682_v18 = vcombine.high %v1101_v19, %v1115_v7  ;;  %v1266_v21 = vrot.slane %v1256_v8, %v1794_v15  ;;  %v1273_v32 = vrot.slane %v1681_v23, %v1794_v15  ;;  %v1058_v33 = vpop.f32.mrb[1].mxu1 }
 0x17d   :  { %v1164_v17 = vrot.slane %v1136_v10, %v1794_v15  ;;  %v1305_v36 = vcombine.low %v1143_v6, %v1157_v12  ;;  %v1683_v37 = vcombine.high %v1143_v6, %v1157_v12  ;;  %v1059_v38 = vpop.f32.mrb[2].mxu1  ;;  %v1464_v48 = vrot.slane %v1150_v11, %v1794_v15 }
 0x17e   :  { %v1280_v39 = vrot.slane %v1258_v16, %v1794_v15  ;;  %v1287_v40 = vrot.slane %v1682_v18, %v1794_v15  ;;  %v1288_v42 = vcombine.low %v1266_v21, %v1273_v32  ;;  %v1061_v49 = vpop.f32.mrb[3].mxu1  ;;  %v1057_v29 = vadd.f32 %v1668_v28, %v1056_v13 }
 0x17f   :  { %v1307_v27 = vcombine.low %v1150_v11, %v1164_v17  ;;  %v2117_v44 = vrot.slane %v1305_v36, %v1794_v15  ;;  %v1321_v34 = vrot.slane %v1683_v37, %v1794_v15  ;;  %v1060_v46 = vadd.f32 %v1668_v28, %v1059_v38 }
 0x180   :  { %v1289_v25 = vcombine.low %v1280_v39, %v1287_v40  ;;  %v1296_v47 = vrot.slane %v1288_v42, %v1794_v15  ;;  %v1538_v58 = vrot.slane %v1165_v14, %v1794_v15  ;;  %v1065_v0 = vmax.f32 %v1057_v29, 0.0 }
 0x181   :  { %v1328_v45 = vrot.slane %v1307_v27, %v1794_v15  ;;  %v1329_v9 = vcombine.low %v2117_v44, %v1321_v34  ;;  %v1471_v51 = vrot.slane %v1464_v48, %v1794_v15  ;;  %v1167_v43 = vcombine.high %v1164_v17, %v1164_v17 }
 0x182   :  { %v1303_v35 = vrot.slane %v1289_v25, %v1794_v15  ;;  %v1066_v26 = vmax.f32 %v1060_v46, 0.0  ;;  %v1539_v22 = vcombine.low %v2117_v44, %v1538_v58  ;;  %v1168_v54 = vcombine.high %v1065_v0, %v1065_v0 }
 0x183   :  { %v2127_v50 = vrot.slane %v1329_v9, %v1794_v15  ;;  %v1175_v28 = vrot.slane %v1065_v0, %v1794_v15  ;;  %v1343_v55 = vrot.slane %v1328_v45, %v1794_v15 }
 0x184   :  { %v2130_v53 = vcombine.low %v1296_v47, %v1303_v35  ;;  %v1217_v57 = vcombine.high %v1066_v26, %v1066_v26  ;;  %v1224_v59 = vrot.slane %v1066_v26, %v1794_v15  ;;  %v1182_v24 = vrot.slane %v1168_v54, %v1794_v15 }
 0x185   :  { %v1472_v56 = vcombine.low %v2127_v50, %v1471_v51  ;;  %v1183_v61 = vcombine.high %v1175_v28, %v1175_v28  ;;  %v1191_v52 = vrot.slane %v1175_v28, %v1794_v15  ;;  %v1344_v30 = vcombine.low %v2127_v50, %v1343_v55 }
 0x186   :  { %v1491_v60 = vsel %vm1490_vm3, %v2130_v53, -inf  ;;  %v1231_v63 = vrot.slane %v1217_v57, %v1794_v15  ;;  %v1232_v1 = vcombine.high %v1224_v59, %v1224_v59  ;;  %v1239_v2 = vrot.slane %v1224_v59, %v1794_v15 }
 0x187   :  { %v1493_v62 = vsel %vm1492_vm4, %v1472_v56, -inf  ;;  %v1184_v41 = vcombine.high %v1182_v24, %v1182_v24  ;;  %v1198_v4 = vrot.slane %v1182_v24, %v1794_v15  ;;  %v1205_v5 = vrot.slane %v1183_v61, %v1794_v15 }
 0x188   :  { %v1494_v3 = vmax.f32 %v1491_v60, %v1493_v62  ;;  %v1213_v31 = vcombine.high %v1191_v52, %v1191_v52  ;;  %v1345_v19 = vcombine.low %v1167_v43, %v1191_v52  ;;  %v1253_v20 = vrot.slane %v1232_v1, %v1794_v15 }
 0x189   :  { %v1212_v6 = vrot.slane %v1184_v41, %v1794_v15  ;;  %v1214_v7 = vcombine.high %v1198_v4, %v1198_v4  ;;  %v1215_v8 = vcombine.high %v1205_v5, %v1205_v5  ;;  %v1246_v23 = vrot.slane %v1231_v63, %v1794_v15 }
 0x18a   :  { %v1346_v10 = vcombine.low %v1205_v5, %v1213_v31  ;;  %v1355_v11 = vrot.slane %v1345_v19, %v1794_v15  ;;  %v1254_v12 = vcombine.high %v1239_v2, %v1239_v2  ;;  %v1255_v13 = vcombine.high %v1253_v20, %v1253_v20 }
 0x18b   :  { %v1495_v16 = vrot.slane %v1494_v3, 4  ;;  %v1347_v18 = vcombine.low %v1215_v8, %v1198_v4  ;;  %v1348_v21 = vcombine.low %v1212_v6, %v1214_v7  ;;  %v1216_v32 = vcombine.high %v1212_v6, %v1212_v6 }
 0x18c   :  { %v1362_v33 = vrot.slane %v1346_v10, %v1794_v15  ;;  %v1395_v17 = vcombine.low %v1253_v20, %v1254_v12  ;;  %v1396_v36 = vcombine.low %v1255_v13, %v1246_v23  ;;  %v1479_v37 = vrot.slane %v1255_v13, %v1794_v15 }
 0x18d   :  { %v1369_v38 = vrot.slane %v1347_v18, %v1794_v15  ;;  %v1376_v39 = vrot.slane %v1348_v21, %v1794_v15  ;;  %v1394_v40 = vcombine.low %v1216_v32, %v1239_v2  ;;  %v1439_v42 = vsel %vm1438_vm5, %v2130_v53, -inf }
 0x18e   :  { %v1546_v14 = vrot.slane %v1539_v22, %v1794_v15  ;;  %v1377_v49 = vcombine.low %v1355_v11, %v1362_v33  ;;  %v1417_v27 = vrot.slane %v1396_v36, %v1794_v15  ;;  %v1553_v44 = vrot.slane %v1253_v20, %v1794_v15 }
 0x18f   :  { %v1378_v34 = vcombine.low %v1369_v38, %v1376_v39  ;;  %v1403_v48 = vrot.slane %v1394_v40, %v1794_v15  ;;  %v1410_v25 = vrot.slane %v1395_v17, %v1794_v15  ;;  %v1441_v29 = vsel %vm1440_vm6, %v1344_v30, -inf }
 0x190   :  { %v1385_v45 = vrot.slane %v1377_v49, %v1794_v15  ;;  %v1486_v9 = vrot.slane %v1479_v37, %v1794_v15  ;;  %v1442_v46 = vmax.f32 %v1439_v42, %v1441_v29  ;;  %v1496_v47 = vmax.f32 %v1494_v3, %v1495_v16 }
 0x191   :  { %v1392_v35 = vrot.slane %v1378_v34, %v1794_v15  ;;  %v1418_v58 = vcombine.low %v1403_v48, %v1410_v25  ;;  %v1554_v0 = vcombine.low %v1403_v48, %v1553_v44  ;;  %v1513_v51 = vsel %vm1512_vm7, %v2130_v53, -inf }
 0x192   :  { %v1432_v43 = vrot.slane %v1417_v27, %v1794_v15  ;;  %v1443_v26 = vrot.slane %v1442_v46, 4  ;;  %v1515_v22 = vsel %vm1514_vm8, %v2127_v50, -inf  ;;  %v1565_v54 = vsel %vm1564_vm9, %v2130_v53, -inf }
 0x193   :  { %v1393_v28 = vcombine.low %v1385_v45, %v1392_v35  ;;  %v1425_v55 = vrot.slane %v1418_v58, %v1794_v15  ;;  %v1561_v56 = vrot.slane %v1554_v0, %v1794_v15  ;;  %v1567_v57 = vsel %vm1566_vm10, %v1546_v14, -inf }
 0x194   :  { %v1444_v59 = vmax.f32 %v1442_v46, %v1443_v26  ;;  %v1516_v60 = vmax.f32 %v1513_v51, %v1515_v22  ;;  %v1568_v24 = vmax.f32 %v1565_v54, %v1567_v57  ;;  %v1497_v62 = vrot.slane %v1496_v47, 2 }
 0x195   :  { %v1433_v61 = vcombine.low %v1425_v55, %v1432_v43  ;;  %v1487_v52 = vcombine.low %v1425_v55, %v1486_v9  ;;  %v1524_v63 = vsel %vm1514_vm8, %v1425_v55, -inf  ;;  %v1576_v50 = vsel %vm1566_vm10, %v1561_v56, -inf }
 0x196   :  { %v1449_v1 = vsel %vm1438_vm5, %v1393_v28, -inf  ;;  %v1501_v53 = vsel %vm1490_vm3, %v1393_v28, -inf  ;;  %v1517_v3 = vrot.slane %v1516_v60, 4  ;;  %v1523_v41 = vsel %vm1512_vm7, %v1393_v28, -inf }
 0x197   :  { %v1502_v2 = vsel %vm1492_vm4, %v1487_v52, -inf  ;;  %v1450_v15 = vsel %vm1440_vm6, %v1433_v61, -inf  ;;  %v1445_v4 = vrot.slane %v1444_v59, 2  ;;  %v1525_v19 = vmax.f32 %v1523_v41, %v1524_v63 }
 0x198   :  { %v1451_v5 = vmax.f32 %v1449_v1, %v1450_v15  ;;  %v1503_v30 = vmax.f32 %v1501_v53, %v1502_v2  ;;  %v1518_v31 = vmax.f32 %v1516_v60, %v1517_v3  ;;  %v1569_v20 = vrot.slane %v1568_v24, 4 }
 0x199   :  { %v1575_v6 = vsel %vm1564_vm9, %v1393_v28, -inf  ;;  %v1498_v10 = vmax.f32 %v1496_v47, %v1497_v62  ;;  %v1526_v12 = vrot.slane %v1525_v19, 4  ;;  %v1446_v16 = vmax.f32 %v1444_v59, %v1445_v4 }
 0x19a   :  { %v1452_v7 = vrot.slane %v1451_v5, 4  ;;  %v1504_v8 = vrot.slane %v1503_v30, 4  ;;  %v1577_v23 = vmax.f32 %v1575_v6, %v1576_v50  ;;  %v1519_v11 = vrot.slane %v1518_v31, 2 }
 0x19b   :  { %v1570_v13 = vmax.f32 %v1568_v24, %v1569_v20  ;;  %v1527_v17 = vmax.f32 %v1525_v19, %v1526_v12  ;;  %v1499_v40 = vrot.slane %v1498_v10, 1  ;;  %v1447_v49 = vrot.slane %v1446_v16, 1 }
 0x19c   :  { %v1453_v18 = vmax.f32 %v1451_v5, %v1452_v7  ;;  %v1505_v21 = vmax.f32 %v1503_v30, %v1504_v8  ;;  %v1578_v32 = vrot.slane %v1577_v23, 4  ;;  %v1520_v33 = vmax.f32 %v1518_v31, %v1519_v11 }
 0x19d   :  { %v1571_v36 = vrot.slane %v1570_v13, 2  ;;  %v1528_v42 = vrot.slane %v1527_v17, 2  ;;  %v1500_v47 = vmax.f32 %v1498_v10, %v1499_v40  ;;  %v1448_v58 = vmax.f32 %v1446_v16, %v1447_v49 }
 0x19e   :  { %v1454_v37 = vrot.slane %v1453_v18, 2  ;;  %v1506_v38 = vrot.slane %v1505_v21, 2  ;;  %v1579_v39 = vmax.f32 %v1577_v23, %v1578_v32  ;;  %v1521_v48 = vrot.slane %v1520_v33, 1 }
 0x19f   :  { %v1572_v14 = vmax.f32 %v1570_v13, %v1571_v36  ;;  %v1529_v25 = vmax.f32 %v1527_v17, %v1528_v42 }
 0x1a0   :  { %v1455_v27 = vmax.f32 %v1453_v18, %v1454_v37  ;;  %v1507_v44 = vmax.f32 %v1505_v21, %v1506_v38  ;;  %v1580_v34 = vrot.slane %v1579_v39, 2  ;;  %v1522_v26 = vmax.f32 %v1520_v33, %v1521_v48 }
 0x1a1   :  { %v1573_v9 = vrot.slane %v1572_v14, 1  ;;  %v1530_v35 = vrot.slane %v1529_v25, 1 }
 0x1a2   :  { %v1456_v29 = vrot.slane %v1455_v27, 1  ;;  %v1508_v45 = vrot.slane %v1507_v44, 1  ;;  %v1581_v46 = vmax.f32 %v1579_v39, %v1580_v34 }
 0x1a3   :  { %v1531_v22 = vmax.f32 %v1529_v25, %v1530_v35  ;;  %v1574_v54 = vmax.f32 %v1572_v14, %v1573_v9 }
 0x1a4   :  { %v1457_v0 = vmax.f32 %v1455_v27, %v1456_v29  ;;  %v1509_v51 = vmax.f32 %v1507_v44, %v1508_v45  ;;  %v1582_v43 = vrot.slane %v1581_v46, 1 }
 0x1a5   :  { %v1595_v57 = vsel %vm1586_vm11, %v1531_v22, %v1522_v26 }
 0x1a6   :  { %v1583_v28 = vmax.f32 %v1581_v46, %v1582_v43  ;;  %v1587_v55 = vsel %vm1586_vm11, %v1457_v0, %v1448_v58  ;;  %v1591_v56 = vsel %vm1586_vm11, %v1509_v51, %v1500_v47 }
 0x1a7   :  { %v1601_v59 = vsel %vm1438_vm5, %v1587_v55, %v1591_v56 }
 0x1a8   :  { %v1599_v60 = vsel %vm1586_vm11, %v1583_v28, %v1574_v54  ;;  %v1603_v24 = vsel %vm1602_vm12, %v1601_v59, %v1595_v57 }
 0x1a9   :  { %v1605_v61 = vsel %vm1604_vm13, %v1603_v24, %v1599_v60 }
 0x1aa   :  { %1607 = vst.msk [vmem:[#allocation2] sm:$0x3] %vm1606_vm14, %v1605_v61 }
 0x1ab   :  { %1731 = shalt.err (!%p1728_p4)
}
 0x1ac   :  { %s1732_s9 = scalar_lea.hbm %s2204_s3, 32 }
 0x1ad   :  { %p1733_p5 = scmp.ne.s32.totalorder %s2204_s3, %s1732_s9  ;;  %p1736_p6 = scmp.lt.u32.totalorder %s1732_s9, %s2204_s3 }
 0x1af   :  { %p1738_p7 = pnand %p1736_p6, %p1733_p5 }
 0x1b1   :  { %1741 = shalt.err (!%p1738_p7)
}
 0x1b2   :  { %1617 = dma.vmem_to_hbm [thread:$0]  %s1615_s5, 32, %s2204_s3, [#allocation3]  }
 0x1b3   :  { %1742 = dma.done.wait [#allocation3], 32  }
 0x1b4   :  { %1743 = vsyncadd [#allocation3], 4294967264 }
 0x1b5   :  { %1621 = vsyncpa [#allocation3], 1 }

</bundles_post_ra>
